<compile_context>
chip_gen: v7x
topology: tpu7x:2x2x1
jax: 0.10.0
libtpu: 0.0.40
codegen_flags: <defaults>
</compile_context>

<pallas_src>
import jax
import jax.numpy as jnp
from jax.experimental import pallas as pl
from jax.experimental.pallas import tpu as pltpu


def _nac_kernel(inp_ref, ans_ref,
                w1a_ref, w1b_ref, b1_ref,
                w2_ref, b2_ref,
                w3_ref, b3_ref,
                out_ref):
    # Sequence-axis sums with an f32 accumulator (embeddings may be bf16);
    # the 1/S mean factors are pre-folded into w1a/w1b.
    inp_sum = jnp.sum(inp_ref[...], axis=1, dtype=jnp.float32)   # (TB, E)
    ans_sum = jnp.sum(ans_ref[...], axis=1, dtype=jnp.float32)   # (TB, E)

    # First layer without the feature-axis concat:
    #   concat([mean_in, mean_ans]) @ W1 + b1 == mean_in @ W1[:E] + mean_ans @ W1[E:] + b1
    h = (jnp.dot(inp_sum, w1a_ref[...], preferred_element_type=jnp.float32)
         + jnp.dot(ans_sum, w1b_ref[...], preferred_element_type=jnp.float32)
         + b1_ref[...])
    h = jnp.maximum(h, 0.0)

    h = jnp.dot(h, w2_ref[...], preferred_element_type=jnp.float32) + b2_ref[...]
    h = jnp.maximum(h, 0.0)

    # Final width-1 layer emitted lane-dense: (1, H) @ (H, TB) -> (1, TB), so
    # the store is a dense row instead of masked width-1 column writes.
    o = jnp.dot(w3_ref[...], h.T, preferred_element_type=jnp.float32) + b3_ref[...]
    out_ref[...] = jax.nn.sigmoid(o)[None].astype(out_ref.dtype)


def _vmem_capacity_bytes():
    """Physical VMEM per TensorCore; conservative fallback = v7x's 64 MiB."""
    try:
        cap = getattr(pltpu.get_tpu_info(), "vmem_capacity_bytes", None)
        if cap:
            return int(cap)
    except Exception:
        pass
    return 64 << 20


def _choose_batch_tile(B, S_in, S_ans, E, H, emb_itemsize, resident_bytes):
    """Batch tile + vmem limit derived from the chip's actual VMEM capacity."""
    cap = _vmem_capacity_bytes()
    vmem_limit = (cap * 3) // 4          # ~96 MiB on v5e/v6e (128 MiB), ~48 MiB on v7x (64 MiB)

    # Budget left for the pipelined embedding tiles after the resident
    # weights/biases (double-buffered by default -> 2x) and fixed compiler slack.
    input_budget = max(1 << 20, vmem_limit - 2 * resident_bytes - (4 << 20))

    # Per batch row: 2 pipeline buffers of the embeddings (both inputs counted
    # once - bytes already include S_in + S_ans), the f32 transient of the seq
    # reduction (conservative), and the f32 activations.
    emb_row = (S_in + S_ans) * E * emb_itemsize
    per_row = 2 * emb_row + (S_in + S_ans) * E * 4 + (2 * E + 2 * H) * 4

    tb = max(1, int(input_budget // per_row))

    if B >= 64:
        # Keep at least 2 grid steps so the "parallel" batch axis can be
        # sharded across both TensorCores on 2-TC chips (v7x); the extra grid
        # step is negligible on 1-TC chips (v5e/v6e).
        tb = min(tb, ((pl.cdiv(B, 2) + 7) // 8) * 8)

    if tb >= B:
        return B, vmem_limit
    # TODO(synk): if per-row bytes are so large that even TB=8 blows the budget,
    # stream the seq axis as a second "arbitrary" grid dim with a (TB, E) f32
    # accumulator (and/or deepen the embedding pipeline) instead of holding the
    # whole sequence per tile.
    return max(8, (tb // 8) * 8), vmem_limit


def not_answerable_classifier(input_embeddings, answer_embeddings, params, *,
                              embeddings_dtype=jnp.bfloat16, max_batch_tile=None):
    """input_embeddings: (B, S1, E), answer_embeddings: (B, S2, E) -> (B, 1) probs.

    params = (w1, b1, w2, b2, w3, b3); w_k: (in_features, out_features),
    b_k: (1, out_features) (transposed vs. PyTorch nn.Linear storage).
    Embeddings are streamed to the kernel as bf16 by default (seq-sum is
    accumulated in f32); pass embeddings_dtype=None to keep the input dtype.
    """
    B, S_in, E = input_embeddings.shape
    _, S_ans, _ = answer_embeddings.shape
    w1, b1, w2, b2, w3, b3 = params
    H = w1.shape[1]

    if embeddings_dtype is not None:
        input_embeddings = input_embeddings.astype(embeddings_dtype)
        answer_embeddings = answer_embeddings.astype(embeddings_dtype)

    # One-time param prep (tiny, outside the kernel): split W1 into its
    # input / answer halves with the 1/S mean factors folded in; W3 as a row.
    w1a = (w1[:E] * (1.0 / S_in)).astype(jnp.float32)
    w1b = (w1[E:] * (1.0 / S_ans)).astype(jnp.float32)
    b1 = b1.astype(jnp.float32)
    w2 = w2.astype(jnp.float32)
    b2 = b2.astype(jnp.float32)
    w3_row = w3.reshape(1, H).astype(jnp.float32)
    b3 = b3.reshape(1, 1).astype(jnp.float32)

    weights = (w1a, w1b, b1, w2, b2, w3_row, b3)
    resident_bytes = sum(int(x.size) * x.dtype.itemsize for x in weights)

    emb_itemsize = jnp.dtype(input_embeddings.dtype).itemsize
    TB, vmem_limit = _choose_batch_tile(B, S_in, S_ans, E, H, emb_itemsize,
                                        resident_bytes)
    if max_batch_tile is not None:                 # test hook
        TB = max(1, min(TB, int(max_batch_tile)))
    num_tiles = pl.cdiv(B, TB)

    def _resident(shape):
        # Weights / biases: full array, same block every grid step (resident).
        return pl.BlockSpec(shape, lambda i: (0,) * len(shape))

    # Advisory cost: large HBM reader, trivial compute, B sigmoids.
    emb_bytes = B * (S_in + S_ans) * E * emb_itemsize
    cost = pl.CostEstimate(
        flops=int(B * ((S_in + S_ans) * E + 2 * (2 * E * H + H * H + H))),
        transcendentals=int(B),
        bytes_accessed=int(emb_bytes + resident_bytes + num_tiles * TB * 4),
    )

    out = pl.pallas_call(
        _nac_kernel,
        out_shape=jax.ShapeDtypeStruct((num_tiles, 1, TB), jnp.float32),
        grid=(num_tiles,),
        in_specs=[
            pl.BlockSpec((TB, S_in, E), lambda i: (i, 0, 0)),    # input embeddings
            pl.BlockSpec((TB, S_ans, E), lambda i: (i, 0, 0)),   # answer embeddings
            _resident((E, H)),    # w1a (mean-folded)
            _resident((E, H)),    # w1b (mean-folded)
            _resident((1, H)),    # b1
            _resident((H, H)),    # w2
            _resident((1, H)),    # b2
            _resident((1, H)),    # w3 as a row
            _resident((1, 1)),    # b3
        ],
        out_specs=pl.BlockSpec((1, 1, TB), lambda i: (i, 0, 0)),  # lane-dense rows
        compiler_params=pltpu.CompilerParams(
            dimension_semantics=("parallel",),
            vmem_limit_bytes=int(vmem_limit),
        ),
        cost_estimate=cost,
    )(input_embeddings, answer_embeddings, *weights)

    # (num_tiles, 1, TB) -> (B, 1); padded rows of a ragged last tile are
    # simply dropped here (no reliance on masked OOB stores).
    return out.reshape(num_tiles * TB)[:B].reshape(B, 1)


def init_params(key, emb_dim, hidden_dim, num_layers):
    """Init matching the MLP layer shapes: [2*emb_dim -> hidden]* ... -> 1."""
    input_dim = emb_dim * 2
    dims_in = [input_dim] + [hidden_dim] * (num_layers - 1)
    dims_out = [hidden_dim] * (num_layers - 1) + [1]

    params = []
    for n_in, n_out in zip(dims_in, dims_out):
        key, kw, kb = jax.random.split(key, 3)
        bound = 1.0 / (n_in ** 0.5)  # PyTorch nn.Linear default uniform bound
        w = jax.random.uniform(kw, (n_in, n_out), jnp.float32, -bound, bound)
        b = jax.random.uniform(kb, (1, n_out), jnp.float32, -bound, bound)
        params.extend([w, b])
    return tuple(params)


def reference_forward(input_embeddings, answer_embeddings, params):
    """Plain-JAX f32 reference of the PyTorch forward for sanity checking."""
    w1, b1, w2, b2, w3, b3 = params
    x = jnp.concatenate(
        [input_embeddings.mean(axis=1), answer_embeddings.mean(axis=1)], axis=1)
    h = jnp.maximum(x @ w1 + b1, 0.0)
    h = jnp.maximum(h @ w2 + b2, 0.0)
    return jax.nn.sigmoid(h @ w3 + b3)


if __name__ == "__main__":
    # Small shapes consistent with the module: batch=2, seq=8, emb_dim=32,
    # hidden_dim=32, num_layers=3  => MLP layers: 64->32, 32->32, 32->1
    B, S_in, S_ans, EMB, HID, NLAYERS = 2, 8, 8, 32, 32, 3

    key = jax.random.PRNGKey(0)
    k_in, k_ans, k_p = jax.random.split(key, 3)
    input_embeddings = jax.random.normal(k_in, (B, S_in, EMB), jnp.float32)
    answer_embeddings = jax.random.normal(k_ans, (B, S_ans, EMB), jnp.float32)
    params = init_params(k_p, EMB, HID, NLAYERS)

    ref = reference_forward(input_embeddings, answer_embeddings, params)

    # Default path: bf16 embedding stream, f32 accumulation in-kernel.
    probs = not_answerable_classifier(input_embeddings, answer_embeddings, params)
    probs = jax.block_until_ready(probs)
    assert probs.shape == (B, 1)
    assert jnp.allclose(probs, ref, atol=2e-3, rtol=2e-3)

    # Exactness check with f32 embeddings (no bf16 cast).
    probs_f32 = not_answerable_classifier(
        input_embeddings, answer_embeddings, params, embeddings_dtype=None)
    probs_f32 = jax.block_until_ready(probs_f32)
    assert jnp.allclose(probs_f32, ref, atol=1e-5, rtol=1e-5)

    # Multi-tile + ragged batch (B % TB != 0) check.
    B2 = 20
    k_in2, k_ans2 = jax.random.split(jax.random.PRNGKey(1))
    inp2 = jax.random.normal(k_in2, (B2, S_in, EMB), jnp.float32)
    ans2 = jax.random.normal(k_ans2, (B2, S_ans, EMB), jnp.float32)
    ref2 = reference_forward(inp2, ans2, params)
    probs2 = not_answerable_classifier(inp2, ans2, params, max_batch_tile=8)
    probs2 = jax.block_until_ready(probs2)
    assert probs2.shape == (B2, 1)
    assert jnp.allclose(probs2, ref2, atol=2e-3, rtol=2e-3)

    print("KERNEL_OK")
</pallas_src>

<mosaic_0001>
module attributes {stable_mosaic.version = 11 : i64} {
  func.func @_nac_kernel(%arg0: i32, %arg1: memref<2x8x32xbf16, #tpu.memory_space<vmem>>, %arg2: memref<2x8x32xbf16, #tpu.memory_space<vmem>>, %arg3: memref<32x32xf32, #tpu.memory_space<vmem>>, %arg4: memref<32x32xf32, #tpu.memory_space<vmem>>, %arg5: memref<1x32xf32, #tpu.memory_space<vmem>>, %arg6: memref<32x32xf32, #tpu.memory_space<vmem>>, %arg7: memref<1x32xf32, #tpu.memory_space<vmem>>, %arg8: memref<1x32xf32, #tpu.memory_space<vmem>>, %arg9: memref<1x1xf32, #tpu.memory_space<vmem>>, %arg10: memref<1x1x2xf32, #tpu.memory_space<vmem>>) attributes {dimension_semantics = [#tpu.dimension_semantics<parallel>], iteration_bounds = array<i64: 1>, scalar_prefetch = 0 : i64, scratch_operands = 0 : i64, tpu.core_type = #tpu.core_type<tc>, window_params = [{transform_indices = @transform_0, window_bounds = array<i64: 2, 8, 32>}, {transform_indices = @transform_1, window_bounds = array<i64: 2, 8, 32>}, {pipeline_mode = #tpu.pipeline_mode<synchronous>, transform_indices = @transform_2, window_bounds = array<i64: 32, 32>}, {pipeline_mode = #tpu.pipeline_mode<synchronous>, transform_indices = @transform_3, window_bounds = array<i64: 32, 32>}, {pipeline_mode = #tpu.pipeline_mode<synchronous>, transform_indices = @transform_4, window_bounds = array<i64: 1, 32>}, {pipeline_mode = #tpu.pipeline_mode<synchronous>, transform_indices = @transform_5, window_bounds = array<i64: 32, 32>}, {pipeline_mode = #tpu.pipeline_mode<synchronous>, transform_indices = @transform_6, window_bounds = array<i64: 1, 32>}, {pipeline_mode = #tpu.pipeline_mode<synchronous>, transform_indices = @transform_7, window_bounds = array<i64: 1, 32>}, {pipeline_mode = #tpu.pipeline_mode<synchronous>, transform_indices = @transform_8, window_bounds = array<i64: 1, 1>}, {transform_indices = @transform_9, window_bounds = array<i64: 1, 1, 2>}]} {
    %c0 = arith.constant 0 : index
    %c0_0 = arith.constant 0 : index
    %c0_1 = arith.constant 0 : index
    %0 = vector.load %arg1[%c0, %c0_0, %c0_1] : memref<2x8x32xbf16, #tpu.memory_space<vmem>>, vector<2x8x32xbf16>
    %1 = arith.extf %0 : vector<2x8x32xbf16> to vector<2x8x32xf32>
    %cst = arith.constant dense<0.000000e+00> : vector<2x32xf32>
    %2 = vector.multi_reduction <add>, %1, %cst [1] : vector<2x8x32xf32> to vector<2x32xf32>
    %c0_2 = arith.constant 0 : index
    %c0_3 = arith.constant 0 : index
    %c0_4 = arith.constant 0 : index
    %3 = vector.load %arg2[%c0_2, %c0_3, %c0_4] : memref<2x8x32xbf16, #tpu.memory_space<vmem>>, vector<2x8x32xbf16>
    %4 = arith.extf %3 : vector<2x8x32xbf16> to vector<2x8x32xf32>
    %cst_5 = arith.constant dense<0.000000e+00> : vector<2x32xf32>
    %5 = vector.multi_reduction <add>, %4, %cst_5 [1] : vector<2x8x32xf32> to vector<2x32xf32>
    %c0_6 = arith.constant 0 : index
    %c0_7 = arith.constant 0 : index
    %6 = vector.load %arg3[%c0_6, %c0_7] : memref<32x32xf32, #tpu.memory_space<vmem>>, vector<32x32xf32>
    %cst_8 = arith.constant dense<0.000000e+00> : vector<2x32xf32>
    %7 = tpu.matmul %2, %6, %cst_8 {dimension_numbers = #tpu.dot_dimension_numbers<[1], [0], [0], [1], [0, 0, 1, 1], [], []>} : vector<2x32xf32>, vector<32x32xf32>, vector<2x32xf32> -> vector<2x32xf32>
    %c0_9 = arith.constant 0 : index
    %c0_10 = arith.constant 0 : index
    %8 = vector.load %arg4[%c0_9, %c0_10] : memref<32x32xf32, #tpu.memory_space<vmem>>, vector<32x32xf32>
    %cst_11 = arith.constant dense<0.000000e+00> : vector<2x32xf32>
    %9 = tpu.matmul %5, %8, %cst_11 {dimension_numbers = #tpu.dot_dimension_numbers<[1], [0], [0], [1], [0, 0, 1, 1], [], []>} : vector<2x32xf32>, vector<32x32xf32>, vector<2x32xf32> -> vector<2x32xf32>
    %10 = arith.addf %7, %9 : vector<2x32xf32>
    %c0_12 = arith.constant 0 : index
    %c0_13 = arith.constant 0 : index
    %11 = vector.load %arg5[%c0_12, %c0_13] : memref<1x32xf32, #tpu.memory_space<vmem>>, vector<1x32xf32>
    %12 = vector.broadcast %11 : vector<1x32xf32> to vector<2x32xf32>
    %13 = arith.addf %10, %12 : vector<2x32xf32>
    %cst_14 = arith.constant 0.000000e+00 : f32
    %14 = vector.broadcast %cst_14 : f32 to vector<2x32xf32>
    %15 = arith.maximumf %13, %14 : vector<2x32xf32>
    %c0_15 = arith.constant 0 : index
    %c0_16 = arith.constant 0 : index
    %16 = vector.load %arg6[%c0_15, %c0_16] : memref<32x32xf32, #tpu.memory_space<vmem>>, vector<32x32xf32>
    %cst_17 = arith.constant dense<0.000000e+00> : vector<2x32xf32>
    %17 = tpu.matmul %15, %16, %cst_17 {dimension_numbers = #tpu.dot_dimension_numbers<[1], [0], [0], [1], [0, 0, 1, 1], [], []>} : vector<2x32xf32>, vector<32x32xf32>, vector<2x32xf32> -> vector<2x32xf32>
    %c0_18 = arith.constant 0 : index
    %c0_19 = arith.constant 0 : index
    %18 = vector.load %arg7[%c0_18, %c0_19] : memref<1x32xf32, #tpu.memory_space<vmem>>, vector<1x32xf32>
    %19 = vector.broadcast %18 : vector<1x32xf32> to vector<2x32xf32>
    %20 = arith.addf %17, %19 : vector<2x32xf32>
    %cst_20 = arith.constant 0.000000e+00 : f32
    %21 = vector.broadcast %cst_20 : f32 to vector<2x32xf32>
    %22 = arith.maximumf %20, %21 : vector<2x32xf32>
    %c0_21 = arith.constant 0 : index
    %c0_22 = arith.constant 0 : index
    %23 = vector.load %arg8[%c0_21, %c0_22] : memref<1x32xf32, #tpu.memory_space<vmem>>, vector<1x32xf32>
    %24 = tpu.transpose %22, [1, 0] : vector<2x32xf32> -> vector<32x2xf32>
    %cst_23 = arith.constant dense<0.000000e+00> : vector<1x2xf32>
    %25 = tpu.matmul %23, %24, %cst_23 {dimension_numbers = #tpu.dot_dimension_numbers<[1], [0], [0], [1], [0, 0, 1, 1], [], []>} : vector<1x32xf32>, vector<32x2xf32>, vector<1x2xf32> -> vector<1x2xf32>
    %c0_24 = arith.constant 0 : index
    %c0_25 = arith.constant 0 : index
    %26 = vector.load %arg9[%c0_24, %c0_25] : memref<1x1xf32, #tpu.memory_space<vmem>>, vector<1x1xf32>
    %27 = vector.broadcast %26 : vector<1x1xf32> to vector<1x2xf32>
    %28 = arith.addf %25, %27 : vector<1x2xf32>
    %29 = arith.negf %28 : vector<1x2xf32>
    %30 = math.exp %29 : vector<1x2xf32>
    %cst_26 = arith.constant 1.000000e+00 : f32
    %31 = vector.broadcast %cst_26 : f32 to vector<1x2xf32>
    %32 = arith.addf %31, %30 : vector<1x2xf32>
    %33 = arith.divf %31, %32 : vector<1x2xf32>
    %34 = vector.shape_cast %33 : vector<1x2xf32> to vector<1x1x2xf32>
    %c0_27 = arith.constant 0 : index
    %c0_28 = arith.constant 0 : index
    %c0_29 = arith.constant 0 : index
    %35 = vector.load %arg10[%c0_27, %c0_28, %c0_29] : memref<1x1x2xf32, #tpu.memory_space<vmem>>, vector<1x1x2xf32>
    tpu.vector_store %arg10[%c0_27, %c0_28, %c0_29], %34 {strides = array<i32>} : memref<1x1x2xf32, #tpu.memory_space<vmem>>, vector<1x1x2xf32>,
    return
  }
  func.func @transform_0(%arg0: i32) -> (i32, i32, i32) {
    %c0_i32 = arith.constant 0 : i32
    %c0_i32_0 = arith.constant 0 : i32
    %c0_i32_1 = arith.constant 0 : i32
    return %arg0, %c0_i32, %c0_i32_0 : i32, i32, i32
  }
  func.func @transform_1(%arg0: i32) -> (i32, i32, i32) {
    %c0_i32 = arith.constant 0 : i32
    %c0_i32_0 = arith.constant 0 : i32
    %c0_i32_1 = arith.constant 0 : i32
    return %arg0, %c0_i32, %c0_i32_0 : i32, i32, i32
  }
  func.func @transform_2(%arg0: i32) -> (i32, i32) {
    %c0_i32 = arith.constant 0 : i32
    %c0_i32_0 = arith.constant 0 : i32
    %c0_i32_1 = arith.constant 0 : i32
    return %c0_i32, %c0_i32_0 : i32, i32
  }
  func.func @transform_3(%arg0: i32) -> (i32, i32) {
    %c0_i32 = arith.constant 0 : i32
    %c0_i32_0 = arith.constant 0 : i32
    %c0_i32_1 = arith.constant 0 : i32
    return %c0_i32, %c0_i32_0 : i32, i32
  }
  func.func @transform_4(%arg0: i32) -> (i32, i32) {
    %c0_i32 = arith.constant 0 : i32
    %c0_i32_0 = arith.constant 0 : i32
    %c0_i32_1 = arith.constant 0 : i32
    return %c0_i32, %c0_i32_0 : i32, i32
  }
  func.func @transform_5(%arg0: i32) -> (i32, i32) {
    %c0_i32 = arith.constant 0 : i32
    %c0_i32_0 = arith.constant 0 : i32
    %c0_i32_1 = arith.constant 0 : i32
    return %c0_i32, %c0_i32_0 : i32, i32
  }
  func.func @transform_6(%arg0: i32) -> (i32, i32) {
    %c0_i32 = arith.constant 0 : i32
    %c0_i32_0 = arith.constant 0 : i32
    %c0_i32_1 = arith.constant 0 : i32
    return %c0_i32, %c0_i32_0 : i32, i32
  }
  func.func @transform_7(%arg0: i32) -> (i32, i32) {
    %c0_i32 = arith.constant 0 : i32
    %c0_i32_0 = arith.constant 0 : i32
    %c0_i32_1 = arith.constant 0 : i32
    return %c0_i32, %c0_i32_0 : i32, i32
  }
  func.func @transform_8(%arg0: i32) -> (i32, i32) {
    %c0_i32 = arith.constant 0 : i32
    %c0_i32_0 = arith.constant 0 : i32
    %c0_i32_1 = arith.constant 0 : i32
    return %c0_i32, %c0_i32_0 : i32, i32
  }
  func.func @transform_9(%arg0: i32) -> (i32, i32, i32) {
    %c0_i32 = arith.constant 0 : i32
    %c0_i32_0 = arith.constant 0 : i32
    %c0_i32_1 = arith.constant 0 : i32
    return %arg0, %c0_i32, %c0_i32_0 : i32, i32, i32
  }
}

</mosaic_0001>

<bundles_post_ra>
// kernel: tpu_custom_call.1
= control target key start
LH: loop header
LB: loop body
LE: loop exit
PB: predicated region body
PF: predicated region fallthrough
CT: control target
= control target key end

     0   :  { %s940_s0 = inlined_call_operand.hbm [shape: bf16[2,8,32], index: 0, kind: input, shape index: {}]   ;;  %s941_s1 = inlined_call_operand.hbm [shape: bf16[2,8,32], index: 1, kind: input, shape index: {}]   ;;  %s942_s2 = inlined_call_operand.hbm [shape: f32[32,32], index: 2, kind: input, shape index: {}]   ;;  %s943_s3 = inlined_call_operand.hbm [shape: f32[32,32], index: 3, kind: input, shape index: {}]   ;;  %s944_s4 = inlined_call_operand.vmem [shape: f32[1,32], index: 4, kind: input, shape index: {}]   ;;  %s945_s5 = inlined_call_operand.hbm [shape: f32[32,32], index: 5, kind: input, shape index: {}]   ;;  %s946_s6 = inlined_call_operand.vmem [shape: f32[1,32], index: 6, kind: input, shape index: {}]   ;;  %s947_s7 = inlined_call_operand.vmem [shape: f32[1,32], index: 7, kind: input, shape index: {}]   ;;  %s948_s8 = inlined_call_operand.<no memory space> [shape: f32[1,1], index: 8, kind: input, shape index: {}]   ;;  %s949_s9 = inlined_call_operand.hbm [shape: f32[1,1,2], index: 9, kind: output, shape index: {}]  }
   0x1   :  { %v14_v0 = vstv %s948_s8 }
   0x2   :  { %15 = vst [vmem:[#allocation2] sm:$0x1] %v14_v0 }
   0x3   :  { %16 = vsyncpa [#allocation4], 0 }
   0x4   :  { %17 = vsyncpa [#allocation7], 0 }
   0x5   :  { %18 = vsyncpa [#allocation10], 0 }
   0x6   :  { %19 = vsyncpa [#allocation5], 0  ;;  %s753_s11 = smov [#allocation6]   ;;  %s613_s15 = scalar_lea.hbm %s941_s1, 128 }
   0x7   :  { %s37_s12 = sshll.u32 %s753_s11, 4  ;;  %p614_p0 = scmp.ne.s32.totalorder %s941_s1, %s613_s15  ;;  %s38_s12 = int_to_ptr.vmem [resolvable:$true] %s37_s12 }
   0x8   :  { %p617_p1 = scmp.lt.u32.totalorder %s613_s15, %s941_s1 }
   0xa   :  { %p619_p2 = pnand %p617_p1, %p614_p0 }
   0xc   :  { %622 = shalt.err (!%p619_p2)
}
   0xd   :  { %s623_s8 = scalar_lea.vmem %s38_s12, 128  ;;  %p628_p4 = scmp.lt.s32.totalorder %s38_s12, %s38_s12 }
   0xe   :  { %p624_p3 = scmp.ne.s32.totalorder %s38_s12, %s623_s8  ;;  %p629_p5 = scmp.lt.s32.totalorder %s623_s8, %s623_s8 }
  0x10   :  { %p630_p6 = por %p629_p5, %p628_p4 }
  0x12   :  { %p631_p7 = pnand %p630_p6, %p624_p3 }
  0x14   :  { %634 = shalt.err (!%p631_p7)
}
  0x15   :  { %s754_s20 = smov 64   ;;  %s755_s21 = smov 4  }
  0x16   :  { %43 = dma.hbm_to_vmem [thread:$0]  %s941_s1, 128, %s38_s12, [#allocation7], %s754_s20, %s754_s20, %s755_s21  }
  0x17   :  { %s756_s24 = smov [#allocation9]   ;;  %s757_s26 = smov [#allocation3]  }
  0x18   :  { %s61_s25 = sshll.u32 %s756_s24, 4  ;;  %s25_s27 = sshll.u32 %s757_s26, 4  ;;  %s62_s25 = int_to_ptr.vmem [resolvable:$true] %s61_s25  ;;  %s26_s27 = int_to_ptr.vmem [resolvable:$true] %s25_s27 }
  0x19   :  { %s635_s30 = scalar_lea.hbm %s943_s3, 512 }
  0x1a   :  { %p636_p8 = scmp.ne.s32.totalorder %s943_s3, %s635_s30  ;;  %p639_p9 = scmp.lt.u32.totalorder %s635_s30, %s943_s3 }
  0x1c   :  { %p641_p10 = pnand %p639_p9, %p636_p8 }
  0x1e   :  { %644 = shalt.err (!%p641_p10)
}
  0x1f   :  { %s645_s1 = scalar_lea.vmem %s62_s25, 512  ;;  %p650_p12 = scmp.lt.s32.totalorder %s62_s25, %s62_s25 }
  0x20   :  { %p646_p11 = scmp.ne.s32.totalorder %s62_s25, %s645_s1  ;;  %p651_p13 = scmp.lt.s32.totalorder %s645_s1, %s645_s1 }
  0x22   :  { %p652_p0 = por %p651_p13, %p650_p12 }
  0x24   :  { %p653_p1 = pnand %p652_p0, %p646_p11 }
  0x26   :  { %656 = shalt.err (!%p653_p1)
}
  0x27   :  { %s758_s12 = smov 128   ;;  %s759_s15 = smov 8  }
  0x28   :  { %67 = dma.hbm_to_vmem [thread:$0]  %s943_s3, 512, %s62_s25, [#allocation10], %s758_s12, %s758_s12, %s759_s15  }
  0x29   :  { %s657_s8 = scalar_lea.hbm %s940_s0, 128 }
  0x2a   :  { %p658_p2 = scmp.ne.s32.totalorder %s940_s0, %s657_s8  ;;  %p661_p3 = scmp.lt.u32.totalorder %s657_s8, %s940_s0 }
  0x2c   :  { %p663_p4 = pnand %p661_p3, %p658_p2 }
  0x2e   :  { %666 = shalt.err (!%p663_p4)
}
  0x2f   :  { %s667_s28 = scalar_lea.vmem %s26_s27, 128  ;;  %p672_p6 = scmp.lt.s32.totalorder %s26_s27, %s26_s27 }
  0x30   :  { %p668_p5 = scmp.ne.s32.totalorder %s26_s27, %s667_s28  ;;  %p673_p7 = scmp.lt.s32.totalorder %s667_s28, %s667_s28 }
  0x32   :  { %p674_p8 = por %p673_p7, %p672_p6 }
  0x34   :  { %p675_p9 = pnand %p674_p8, %p668_p5 }
  0x36   :  { %678 = shalt.err (!%p675_p9)
}
  0x37   :  { %31 = dma.hbm_to_vmem [thread:$0]  %s940_s0, 128, %s26_s27, [#allocation4], %s754_s20, %s754_s20, %s755_s21  }
  0x38   :  { %s760_s29 = smov [#allocation8]   ;;  %s761_s10 = smov [#allocation11]  }
  0x39   :  { %s49_s30 = sshll.u32 %s760_s29, 4  ;;  %s75_s11 = sshll.u32 %s761_s10, 4  ;;  %s50_s30 = int_to_ptr.vmem [resolvable:$true] %s49_s30  ;;  %s76_s11 = int_to_ptr.vmem [resolvable:$true] %s75_s11 }
  0x3a   :  { %s679_s1 = scalar_lea.hbm %s942_s2, 512 }
  0x3b   :  { %p680_p10 = scmp.ne.s32.totalorder %s942_s2, %s679_s1  ;;  %p683_p11 = scmp.lt.u32.totalorder %s679_s1, %s942_s2 }
  0x3d   :  { %p685_p12 = pnand %p683_p11, %p680_p10 }
  0x3f   :  { %688 = shalt.err (!%p685_p12)
}
  0x40   :  { %s689_s0 = scalar_lea.vmem %s50_s30, 512  ;;  %p694_p0 = scmp.lt.s32.totalorder %s50_s30, %s50_s30 }
  0x41   :  { %p690_p13 = scmp.ne.s32.totalorder %s50_s30, %s689_s0  ;;  %p695_p1 = scmp.lt.s32.totalorder %s689_s0, %s689_s0 }
  0x43   :  { %p696_p2 = por %p695_p1, %p694_p0 }
  0x45   :  { %p697_p3 = pnand %p696_p2, %p690_p13 }
  0x47   :  { %700 = shalt.err (!%p697_p3)
}
  0x48   :  { %55 = dma.hbm_to_vmem [thread:$0]  %s942_s2, 512, %s50_s30, [#allocation7], %s758_s12, %s758_s12, %s759_s15  }
  0x49   :  { %s701_s22 = scalar_lea.hbm %s945_s5, 512 }
  0x4a   :  { %p702_p4 = scmp.ne.s32.totalorder %s945_s5, %s701_s22  ;;  %p705_p5 = scmp.lt.u32.totalorder %s701_s22, %s945_s5 }
  0x4c   :  { %p707_p6 = pnand %p705_p5, %p702_p4 }
  0x4e   :  { %710 = shalt.err (!%p707_p6)
}
  0x4f   :  { %s711_s3 = scalar_lea.vmem %s76_s11, 512  ;;  %p716_p8 = scmp.lt.s32.totalorder %s76_s11, %s76_s11 }
  0x50   :  { %p712_p7 = scmp.ne.s32.totalorder %s76_s11, %s711_s3  ;;  %p717_p9 = scmp.lt.s32.totalorder %s711_s3, %s711_s3 }
  0x52   :  { %p718_p10 = por %p717_p9, %p716_p8 }
  0x54   :  { %p719_p11 = pnand %p718_p10, %p712_p7 }
  0x56   :  { %722 = shalt.err (!%p719_p11)
}
  0x57   :  { %81 = dma.hbm_to_vmem [thread:$0]  %s945_s5, 512, %s76_s11, [#allocation10], %s758_s12, %s758_s12, %s759_s15  }
  0x58   :  { %745 = dma.done.wait [#allocation4], 128  }
  0x59   :  { %746 = vsyncadd [#allocation4], 4294967168 }
  0x5a   :  { %747 = dma.done.wait [#allocation7], 640  }
  0x5b   :  { %748 = vsyncadd [#allocation7], 4294966656 }
  0x5c   :  { %749 = dma.done.wait [#allocation10], 1024  }
  0x5d   :  { %750 = vsyncadd [#allocation10], 4294966272  ;;  %v762_v1 = vmov 0.0|0.0   ;;  %vm763_vm0 = vmmov 0   ;;  %v764_v2 = vmov 0.0   ;;  %v144_v3 = vld [vmem:[#allocation9] sm:$0xff] }
  0x5e   :  { %576 = vmatprep.subr.bf16.mxu0 %v762_v1  ;;  %582 = vmatprep.subr.bf16.mxu1 %v762_v1  ;;  %v145_v4 = vld [vmem:[#allocation9 + $0x8] sm:$0xff]  ;;  %v140_v5 = vld [vmem:[#allocation8] sm:$0xff]  ;;  %v146_v8 = vld [vmem:[#allocation9 + $0x10] sm:$0xff]  ;;  %vm107_vm1 = vcmask 261120   ;;  %vm150_vm2 = vcmask 1041409   ;;  %vm486_vm3 = vcmask 8192  }
  0x5f   :  { %546 = vmatprep.mubr.msk.f32.mxu0 %vm763_vm0, %v764_v2  ;;  %557 = vmatprep.mubr.msk.f32.mxu1 %vm763_vm0, %v764_v2  ;;  %v577_v6 = vpack.c.bf16 %v145_v4, %v144_v3  ;;  %v141_v7 = vld [vmem:[#allocation8 + $0x8] sm:$0xff]  ;;  %v147_v9 = vld [vmem:[#allocation9 + $0x18] sm:$0xff]  ;;  %v142_v11 = vld [vmem:[#allocation8 + $0x10] sm:$0xff]  ;;  %v765_v3 = vmov 0  }
  0x60   :  { %v583_v10 = vpack.c.bf16 %v141_v7, %v140_v5  ;;  %v143_v12 = vld [vmem:[#allocation8 + $0x18] sm:$0xff]  ;;  %v580_v14 = vpack.c.bf16 %v147_v9, %v146_v8  ;;  %v514_v17 = vld [vmem:[#allocation3] sm:$0xff]   ;;  %v308_v51 = vld [vmem:[#allocation11] sm:$0xff]  ;;  %608 = vset.pattern.permute.xlu0 %v765_v3  ;;  %v400_v9 = vlaneseq }
  0x61   :  { %v518_v13 = vld [vmem:[#allocation6] sm:$0xff]   ;;  %578 = vmatpush3.bf16.msra.mxu0 %v577_v6  ;;  %v586_v18 = vpack.c.bf16 %v143_v12, %v142_v11  ;;  %v515_v19 = vunpack.c.l.bf16 %v514_v17  ;;  %v516_v20 = vunpack.c.h.bf16 %v514_v17  ;;  %v309_v52 = vld [vmem:[#allocation11 + $0x8] sm:$0xff]  ;;  %v310_v54 = vld [vmem:[#allocation11 + $0x10] sm:$0xff] }
  0x62   :  { %v519_v15 = vunpack.c.l.bf16 %v518_v13  ;;  %v520_v16 = vunpack.c.h.bf16 %v518_v13  ;;  %584 = vmatpush3.bf16.msra.mxu1 %v583_v10  ;;  %579 = vmatprep.subr.bf16.mxu0 %v762_v1  ;;  %v589_v53 = vpack.c.bf16 %v309_v52, %v308_v51  ;;  %v311_v55 = vld [vmem:[#allocation11 + $0x18] sm:$0xff]  ;;  %v507_v59 = vld [vmem:[%s944_s4] ss:$0 sm:$0xff]  ;;  %v401_v10 = vshrl.u32 %v400_v9, 7 }
  0x63   :  { %585 = vmatprep.subr.bf16.mxu1 %v762_v1  ;;  %v108_v25 = vsel %vm107_vm1, %v515_v19, 0.0  ;;  %v115_v26 = vsel %vm107_vm1, %v516_v20, 0.0  ;;  %v592_v56 = vpack.c.bf16 %v311_v55, %v310_v54  ;;  %v393_v8 = vld [vmem:[%s947_s7] sm:$0x1] }
  0x64   :  { %v126_v21 = vsel %vm107_vm1, %v519_v15, 0.0  ;;  %v133_v22 = vsel %vm107_vm1, %v520_v16, 0.0  ;;  %v109_v27 = vrot.slane %v108_v25, 4  ;;  %v116_v28 = vrot.slane %v115_v26, 4 }
  0x65   :  { %v127_v23 = vrot.slane %v126_v21, 4  ;;  %v134_v24 = vrot.slane %v133_v22, 4  ;;  %581 = vmatpush3.bf16.msra.mxu0 %v580_v14  ;;  %v402_v11 = vsub.s32 0, %v401_v10 }
  0x66   :  { %587 = vmatpush3.bf16.msra.mxu1 %v586_v18  ;;  %588 = vmatprep.subr.bf16.mxu0 %v762_v1  ;;  %v110_v31 = vadd.f32 %v109_v27, %v108_v25  ;;  %v117_v32 = vadd.f32 %v116_v28, %v115_v26 }
  0x67   :  { %v128_v29 = vadd.f32 %v127_v23, %v126_v21  ;;  %v135_v30 = vadd.f32 %v134_v24, %v133_v22  ;;  %571 = vmatprep.subr.mxu1 %v764_v2 }
  0x68   :  { %v111_v35 = vrot.slane %v110_v31, 2  ;;  %v118_v36 = vrot.slane %v117_v32, 2 }
  0x69   :  { %v129_v33 = vrot.slane %v128_v29, 2  ;;  %v136_v34 = vrot.slane %v135_v30, 2 }
  0x6a   :  { %v112_v39 = vadd.f32 %v111_v35, %v110_v31  ;;  %v119_v40 = vadd.f32 %v118_v36, %v117_v32 }
  0x6b   :  { %v130_v37 = vadd.f32 %v129_v33, %v128_v29  ;;  %v137_v38 = vadd.f32 %v136_v34, %v135_v30 }
  0x6c   :  { %v113_v43 = vrot.slane %v112_v39, 1  ;;  %v120_v44 = vrot.slane %v119_v40, 1 }
  0x6d   :  { %v131_v41 = vrot.slane %v130_v37, 1  ;;  %v138_v42 = vrot.slane %v137_v38, 1 }
  0x6e   :  { %v114_v47 = vadd.f32 %v113_v43, %v112_v39  ;;  %v121_v48 = vadd.f32 %v120_v44, %v119_v40 }
  0x6f   :  { %v132_v45 = vadd.f32 %v131_v41, %v130_v37  ;;  %v139_v46 = vadd.f32 %v138_v42, %v137_v38 }
  0x70   :  { %v226_v50 = vsel %vm150_vm2, %v121_v48, %v114_v47 }
  0x71   :  { %v151_v49 = vsel %vm150_vm2, %v139_v46, %v132_v45  ;;  %558 = vmatmul.mubr.msk.f32.vlgmr.msra.gmra.mrb[0].mxu1 %vm107_vm1, %v226_v50 }
  0x72   :  { %547 = vmatmul.mubr.msk.f32.vlgmr.msra.gmra.mrb[0].mxu0 %vm107_vm1, %v151_v49  ;;  %573 = vmatprep.mubr.msk.f32.mxu1 %vm763_vm0, %v764_v2 }
  0x73   :  { %568 = vmatprep.mubr.msk.f32.mxu0 %vm763_vm0, %v764_v2  ;;  %590 = vmatpush3.bf16.msra.mxu0 %v589_v53  ;;  %v394_v2 = vld [vmem:[#allocation2] sm:$0x1] }
  0x74   :  { %591 = vmatprep.subr.bf16.mxu0 %v762_v1  ;;  %397 = vperm.xlu0 %608, %v394_v2   ;;  %v508_v1 = vld [vmem:[%s946_s6] ss:$0 sm:$0xff]  ;;  %s766_s6 = smov [#allocation12]  }
  0x75   :  { %s494_s10 = sshll.u32 %s766_s6, 4  ;;  %s495_s10 = int_to_ptr.vmem [resolvable:$true] %s494_s10 }
  0x76   :  { %s723_s7 = scalar_lea.vmem %s495_s10, 16  ;;  %s727_s11 = scalar_lea.vmem %s495_s10, 32 }
  0x77   :  { %593 = vmatpush3.bf16.msra.mxu0 %v592_v56  ;;  %p724_p12 = scmp.ne.s32.totalorder %s495_s10, %s723_s7  ;;  %p728_p13 = scmp.lt.s32.totalorder %s495_s10, %s495_s10 }
  0x78   :  { %p729_p0 = scmp.lt.s32.totalorder %s727_s11, %s723_s7 }
  0x7a   :  { %p730_p1 = por %p729_p0, %p728_p13 }
  0x7c   :  { %p731_p2 = pnand %p730_p1, %p724_p12 }
  0xf3   :  { %v398_v12 = vpop.permute.xlu0 %397 }
  0xf4   :  { %v403_v13 = vrot.slane %v398_v12, %v402_v11 }
 0x144   :  { %v295_v58 = vpop.f32.mrb[0].mxu1 }
 0x145   :  { %v220_v57 = vpop.f32.mrb[0].mxu0  ;;  %v559_v62 = vpop.f32.mrb[1].mxu1 }
 0x146   :  { %v548_v60 = vpop.f32.mrb[1].mxu0  ;;  %v296_v61 = vadd.f32 %v295_v58, %v220_v57 }
 0x148   :  { %v306_v63 = vadd.f32 %v507_v59, %v296_v61 }
 0x14a   :  { %v307_v0 = vmax.f32 %v306_v63, 0.0 }
 0x14c   :  { %569 = vmatmul.mubr.msk.f32.vlgmr.msra.gmra.mrb[2].mxu0 %vm107_vm1, %v307_v0 }
 0x21f   :  { %v388_v4 = vpop.f32.mrb[2].mxu0 }
 0x220   :  { %v389_v5 = vadd.f32 %v508_v1, %v388_v4  ;;  %v570_v6 = vpop.f32.mrb[3].mxu0 }
 0x222   :  { %v392_v7 = vmax.f32 %v389_v5, 0.0 }
 0x224   :  { %572 = vmatpush3.xpose.msk.msra.mxu1 %vm107_vm1, %v392_v7 }
 0x227   :  { %574 = vmatmul.mubr.msk.f32.vlgmr.msra.gmra.mrb[2].mxu1 %vm107_vm1, %v393_v8 }
 0x2fa   :  { %v476_v14 = vpop.f32.mrb[2].mxu1 }
 0x2fb   :  { %v477_v15 = vadd.f32 %v476_v14, %v403_v13  ;;  %v575_v16 = vpop.f32.mrb[3].mxu1 }
 0x2fd   :  { %v512_v17 = vmul.f32 -1.442695, %v477_v15 }
 0x2ff   :  { %609 = vpow2.f32 %v512_v17 }
 0x309   :  { %v610_v18 = vpop.eup %609 }
 0x30a   :  { %v483_v19 = vadd.f32 1.0, %v610_v18 }
 0x30c   :  { %611 = vrcp.f32 %v483_v19 }
 0x316   :  { %v612_v20 = vpop.eup %611 }
 0x317   :  { %487 = vst.msk [vmem:[#allocation12] sm:$0x1] %vm486_vm3, %v612_v20 }
 0x318   :  { %734 = shalt.err (!%p731_p2)
}
 0x319   :  { %s735_s1 = scalar_lea.hbm %s949_s9, 16 }
 0x31a   :  { %p736_p3 = scmp.ne.s32.totalorder %s949_s9, %s735_s1  ;;  %p739_p4 = scmp.lt.u32.totalorder %s735_s1, %s949_s9 }
 0x31c   :  { %p741_p5 = pnand %p739_p4, %p736_p3 }
 0x31e   :  { %744 = shalt.err (!%p741_p5)
}
 0x31f   :  { %497 = dma.vmem_to_hbm [thread:$0]  %s495_s10, 16, %s949_s9, [#allocation5]  }
 0x320   :  { %751 = dma.done.wait [#allocation5], 16  }
 0x321   :  { %752 = vsyncadd [#allocation5], 4294967280 }
 0x322   :  { %501 = vsyncpa [#allocation4], 1 }
 0x323   :  { %502 = vsyncpa [#allocation7], 1 }
 0x324   :  { %503 = vsyncpa [#allocation10], 1 }
 0x325   :  { %504 = vsyncpa [#allocation5], 1 }

</bundles_post_ra>
